<compile_context>
chip_gen: v7x
topology: tpu7x:2x2x1
jax: 0.10.0
libtpu: 0.0.40
codegen_flags: <defaults>
</compile_context>

<pallas_src>
import functools

import jax
import jax.numpy as jnp
from jax.experimental import pallas as pl
from jax.experimental.pallas import tpu as pltpu

EPS = 1e-5          # torch.nn.BatchNorm1d default eps
NR_CLASSES = 40
PAD3 = 384          # nn3 width 265 padded up to a lane multiple (3 * 128)


# ----------------------------- Pallas kernels ---------------------------------------

def _node_mlp_pool_kernel(x_ref, w_mlp_ref, b_mlp_ref, w1_ref, b1_ref, o_ref,
                          *, n_gra, tile_n):
    """Fused node path: dd2.mlp Linear(384->128)+ReLU (its BN folded into nn1),
    nn1 Linear(128->1024), then max_pool_x accumulated per graph in o_ref."""
    t = pl.program_id(1)

    @pl.when(t == 0)
    def _():
        o_ref[...] = jnp.full(o_ref.shape, -jnp.inf, o_ref.dtype)

    # hoisted broadcast operands (loaded once per tile, not inside expressions)
    b_mlp = b_mlp_ref[...]                                    # [1, 128]  f32
    b1 = b1_ref[...]                                          # [1, 1024] f32

    x = x_ref[0].astype(jnp.bfloat16)                         # [tile_n, 384] MXU operand
    h = jnp.dot(x, w_mlp_ref[...], preferred_element_type=jnp.float32) + b_mlp
    h = jnp.maximum(h, 0.0)                                   # ReLU (BN folded into w1/b1)
    y1 = jnp.dot(h.astype(jnp.bfloat16), w1_ref[...],
                 preferred_element_type=jnp.float32) + b1     # [tile_n, 1024]

    # mask zero-padded node rows so they can never win the segment max
    row = t * tile_n + jax.lax.broadcasted_iota(jnp.int32, (tile_n, 1), 0)
    y1 = jnp.where(row < n_gra, y1, -jnp.inf)

    tile_max = jnp.max(y1, axis=0, keepdims=True).reshape(1, 1, 1024)
    o_ref[...] = jnp.maximum(o_ref[...], tile_max)            # lane-dense 1024-wide store


def _head_kernel(x_ref, w2, b2, w3, b3, w4, b4, o_ref):
    """relu -> (bn1 folded) nn2 -> relu -> (bn2 folded) nn3 -> relu
       -> (bn3 folded) nn4 -> LogSoftmax(dim=1)."""
    x = jnp.maximum(x_ref[...], 0.0)                                          # relu(y1_pool)
    y2 = jnp.dot(x.astype(jnp.bfloat16), w2[...],
                 preferred_element_type=jnp.float32) + b2[...]                # 1024 -> 512
    y2 = jnp.maximum(y2, 0.0)
    y3 = jnp.dot(y2.astype(jnp.bfloat16), w3[...],
                 preferred_element_type=jnp.float32) + b3[...]                # 512 -> 384(pad)
    y3 = jnp.maximum(y3, 0.0)
    y4 = jnp.dot(y3.astype(jnp.bfloat16), w4[...],
                 preferred_element_type=jnp.float32) + b4[...]                # 384 -> 40
    mx = jnp.max(y4, axis=1, keepdims=True)
    z = y4 - mx
    lse = jnp.log(jnp.sum(jnp.exp(z), axis=1, keepdims=True))
    o_ref[...] = z - lse                                                      # [B, 40]


# ----------------------------- host-side param prep ---------------------------------

def _fold_bn_into_next_linear(w, b, g, be, m, v):
    """y = BN(h) @ w + b  ==  h @ (scale*w) + (shift @ w + b), eval-mode BN."""
    scale = g * jax.lax.rsqrt(v + EPS)          # (1, F_in)
    shift = be - m * scale                      # (1, F_in)
    w_f = w * scale.reshape(-1, 1)              # (F_in, F_out)
    b_f = b + shift @ w                         # (1, F_out)
    return w_f, b_f


def _prepare_params(p):
    # dd2's BN sits after the ReLU -> fold it into nn1 (NOT into w_mlp).
    w1f, b1f = _fold_bn_into_next_linear(p["w1"], p["b1"],
                                         p["g_mlp"], p["be_mlp"], p["rm_mlp"], p["rv_mlp"])
    w2f, b2f = _fold_bn_into_next_linear(p["w2"], p["b2"], p["g1"], p["be1"], p["m1"], p["v1"])
    w3f, b3f = _fold_bn_into_next_linear(p["w3"], p["b3"], p["g2"], p["be2"], p["m2"], p["v2"])
    w4f, b4f = _fold_bn_into_next_linear(p["w4"], p["b4"], p["g3"], p["be3"], p["m3"], p["v3"])

    # Pad the odd 265-wide dim to 384: zero cols in w3f/b3f -> relu(0)=0, and the
    # matching w4f rows are zero, so the result is unchanged.
    pad = PAD3 - w3f.shape[1]
    w3f = jnp.pad(w3f, ((0, 0), (0, pad)))
    b3f = jnp.pad(b3f, ((0, 0), (0, pad)))
    w4f = jnp.pad(w4f, ((0, pad), (0, 0)))

    return {
        "w_mlp": p["w_mlp"].astype(jnp.bfloat16), "b_mlp": p["b_mlp"],
        "w1": w1f.astype(jnp.bfloat16), "b1": b1f,
        "w2": w2f.astype(jnp.bfloat16), "b2": b2f,
        "w3": w3f.astype(jnp.bfloat16), "b3": b3f,
        "w4": w4f.astype(jnp.bfloat16), "b4": b4f,
    }


# ----------------------------- wrapper ----------------------------------------------

def run_net(pos, params, *, batch_size, nr_points):
    B, N = batch_size, nr_points

    # TODO(synk): surrogate for knn_graph / ds1 / graclus / avg_pool_x / max_pool_x /
    # DDm directional aggregation (external torch_geometric ops, see header).
    pos3 = pos.reshape(B, N, 3)
    pos_gra = pos3.reshape(B, N // 2, 2, 3).mean(axis=2)            # (B, n_gra, 3)
    n_gra = N // 2
    feats = jnp.tanh(pos_gra @ params["w_lift"])                    # (B, n_gra, 384)

    p = _prepare_params(params)   # BN folding, 265->384 padding, bf16 MXU weights

    # ---- row tiling for the fused node kernel ---------------------------------------
    if n_gra >= 512:
        tile_n = 512                                   # ~4.2 MiB/tile f32-equiv, fits v7x
    else:
        tile_n = max(8, ((n_gra + 7) // 8) * 8)        # small problems: one aligned tile
    n_tiles = pl.cdiv(n_gra, tile_n)
    n_pad = n_tiles * tile_n
    if n_pad != n_gra:
        feats = jnp.pad(feats, ((0, 0), (0, n_pad - n_gra), (0, 0)))

    node_kernel = functools.partial(_node_mlp_pool_kernel, n_gra=n_gra, tile_n=tile_n)

    # ---- fused node MLP + nn1 + per-graph segment max (streaming, pipelined) --------
    y1_pool = pl.pallas_call(
        node_kernel,
        out_shape=jax.ShapeDtypeStruct((B, 1, 1024), jnp.float32),
        grid=(B, n_tiles),
        in_specs=[
            pl.BlockSpec((1, tile_n, 384), lambda b, t: (b, t, 0)),  # streamed node tile
            pl.BlockSpec((384, 128), lambda b, t: (0, 0)),           # resident weights
            pl.BlockSpec((1, 128), lambda b, t: (0, 0)),
            pl.BlockSpec((128, 1024), lambda b, t: (0, 0)),
            pl.BlockSpec((1, 1024), lambda b, t: (0, 0)),
        ],
        out_specs=pl.BlockSpec((1, 1, 1024), lambda b, t: (b, 0, 0)),  # per-graph max acc
        compiler_params=pltpu.CompilerParams(
            dimension_semantics=("parallel", "arbitrary")),
    )(feats, p["w_mlp"], p["b_mlp"], p["w1"], p["b1"])
    y1_pool = y1_pool.reshape(B, 1024)

    # ---- tiny MLP head + LogSoftmax: single un-gridded call (latency-bound) ---------
    vmem = pl.BlockSpec(memory_space=pltpu.MemorySpace.VMEM)
    flops = 2 * B * (1024 * 512 + 512 * PAD3 + PAD3 * NR_CLASSES)
    bytes_accessed = (4 * B * (1024 + NR_CLASSES)
                      + 2 * (1024 * 512 + 512 * PAD3 + PAD3 * NR_CLASSES)
                      + 4 * (512 + PAD3 + NR_CLASSES))
    out = pl.pallas_call(
        _head_kernel,
        out_shape=jax.ShapeDtypeStruct((B, NR_CLASSES), jnp.float32),
        in_specs=[vmem] * 7,
        out_specs=vmem,
        cost_estimate=pl.CostEstimate(flops=flops,
                                      transcendentals=B * NR_CLASSES,
                                      bytes_accessed=bytes_accessed),
    )(y1_pool, p["w2"], p["b2"], p["w3"], p["b3"], p["w4"], p["b4"])
    return out


# ----------------------------- deterministic params ---------------------------------

def init_params(key):
    ks = jax.random.split(key, 12)

    def lin(k, fin, fout):
        kw, kb = jax.random.split(k)
        lim = 1.0 / jnp.sqrt(jnp.float32(fin))
        w = jax.random.uniform(kw, (fin, fout), jnp.float32, -lim, lim)
        b = jax.random.uniform(kb, (1, fout), jnp.float32, -lim, lim)
        return w, b

    def bn(k, f):
        k1, k2, k3, k4 = jax.random.split(k, 4)
        g = 1.0 + 0.1 * jax.random.normal(k1, (1, f), jnp.float32)
        be = 0.1 * jax.random.normal(k2, (1, f), jnp.float32)
        m = 0.1 * jax.random.normal(k3, (1, f), jnp.float32)
        v = 1.0 + 0.1 * jax.random.uniform(k4, (1, f), jnp.float32)
        return g, be, m, v

    p = {}
    p["w_lift"] = 0.5 * jax.random.normal(ks[0], (3, 384), jnp.float32)   # surrogate lift
    p["w_mlp"], p["b_mlp"] = lin(ks[1], 384, 128)                         # dd2.mlp Linear
    p["g_mlp"], p["be_mlp"], p["rm_mlp"], p["rv_mlp"] = bn(ks[2], 128)    # dd2.mlp BN
    p["w1"], p["b1"] = lin(ks[3], 128, 1024)                              # nn1
    p["g1"], p["be1"], p["m1"], p["v1"] = bn(ks[4], 1024)                 # bn1
    p["w2"], p["b2"] = lin(ks[5], 1024, 512)                              # nn2
    p["g2"], p["be2"], p["m2"], p["v2"] = bn(ks[6], 512)                  # bn2
    p["w3"], p["b3"] = lin(ks[7], 512, 265)                               # nn3
    p["g3"], p["be3"], p["m3"], p["v3"] = bn(ks[8], 265)                  # bn3
    p["w4"], p["b4"] = lin(ks[9], 265, NR_CLASSES)                        # nn4
    return p


if __name__ == "__main__":
    key = jax.random.PRNGKey(0)
    kp, kx = jax.random.split(key)
    params = init_params(kp)

    B, N = 2, 16                       # small: 2 graphs, 16 points each
    pos = jax.random.normal(kx, (B * N, 3), jnp.float32)

    out = run_net(pos, params, batch_size=B, nr_points=N)
    out = jax.block_until_ready(out)

    assert out.shape == (B, NR_CLASSES), out.shape
    # log-softmax rows must exponentiate to probability distributions
    assert bool(jnp.allclose(jnp.exp(out).sum(axis=1), 1.0, atol=1e-4))
    print("KERNEL_OK")
</pallas_src>

<mosaic_0001>
module attributes {stable_mosaic.version = 11 : i64} {
  func.func @_node_mlp_pool_kernel(%arg0: i32, %arg1: i32, %arg2: memref<1x8x384xf32, #tpu.memory_space<vmem>>, %arg3: memref<384x128xbf16, #tpu.memory_space<vmem>>, %arg4: memref<1x128xf32, #tpu.memory_space<vmem>>, %arg5: memref<128x1024xbf16, #tpu.memory_space<vmem>>, %arg6: memref<1x1024xf32, #tpu.memory_space<vmem>>, %arg7: memref<1x1x1024xf32, #tpu.memory_space<vmem>>) attributes {dimension_semantics = [#tpu.dimension_semantics<parallel>, #tpu.dimension_semantics<arbitrary>], iteration_bounds = array<i64: 2, 1>, scalar_prefetch = 0 : i64, scratch_operands = 0 : i64, tpu.core_type = #tpu.core_type<tc>, window_params = [{transform_indices = @transform_0, window_bounds = array<i64: 1, 8, 384>}, {pipeline_mode = #tpu.pipeline_mode<synchronous>, transform_indices = @transform_1, window_bounds = array<i64: 384, 128>}, {pipeline_mode = #tpu.pipeline_mode<synchronous>, transform_indices = @transform_2, window_bounds = array<i64: 1, 128>}, {pipeline_mode = #tpu.pipeline_mode<synchronous>, transform_indices = @transform_3, window_bounds = array<i64: 128, 1024>}, {pipeline_mode = #tpu.pipeline_mode<synchronous>, transform_indices = @transform_4, window_bounds = array<i64: 1, 1024>}, {transform_indices = @transform_5, window_bounds = array<i64: 1, 1, 1024>}]} {
    %c0_i32 = arith.constant 0 : i32
    %0 = arith.cmpi eq, %arg1, %c0_i32 : i32
    %1 = arith.extui %0 : i1 to i32
    %c0_i32_0 = arith.constant 0 : i32
    %2 = arith.cmpi ne, %1, %c0_i32_0 : i32
    scf.if %2 {
      %cst_22 = arith.constant 0xFF800000 : f32
      %35 = vector.broadcast %cst_22 : f32 to vector<1x1x1024xf32>
      %c0_23 = arith.constant 0 : index
      %c0_24 = arith.constant 0 : index
      %c0_25 = arith.constant 0 : index
      %36 = vector.load %arg7[%c0_23, %c0_24, %c0_25] : memref<1x1x1024xf32, #tpu.memory_space<vmem>>, vector<1x1x1024xf32>
      tpu.vector_store %arg7[%c0_23, %c0_24, %c0_25], %35 {strides = array<i32>} : memref<1x1x1024xf32, #tpu.memory_space<vmem>>, vector<1x1x1024xf32>,
    } else {
    }
    %c0 = arith.constant 0 : index
    %c0_1 = arith.constant 0 : index
    %3 = vector.load %arg4[%c0, %c0_1] : memref<1x128xf32, #tpu.memory_space<vmem>>, vector<1x128xf32>
    %c0_2 = arith.constant 0 : index
    %c0_3 = arith.constant 0 : index
    %4 = vector.load %arg6[%c0_2, %c0_3] : memref<1x1024xf32, #tpu.memory_space<vmem>>, vector<1x1024xf32>
    %c0_4 = arith.constant 0 : index
    %c0_5 = arith.constant 0 : index
    %c0_6 = arith.constant 0 : index
    %5 = vector.load %arg2[%c0_4, %c0_5, %c0_6] : memref<1x8x384xf32, #tpu.memory_space<vmem>>, vector<1x8x384xf32>
    %6 = vector.shape_cast %5 : vector<1x8x384xf32> to vector<8x384xf32>
    %7 = arith.truncf %6 : vector<8x384xf32> to vector<8x384xbf16>
    %c0_7 = arith.constant 0 : index
    %c0_8 = arith.constant 0 : index
    %8 = vector.load %arg3[%c0_7, %c0_8] : memref<384x128xbf16, #tpu.memory_space<vmem>>, vector<384x128xbf16>
    %cst = arith.constant dense<0.000000e+00> : vector<8x128xf32>
    %9 = tpu.matmul %7, %8, %cst {dimension_numbers = #tpu.dot_dimension_numbers<[1], [0], [0], [1], [0, 0, 1, 1], [], []>} : vector<8x384xbf16>, vector<384x128xbf16>, vector<8x128xf32> -> vector<8x128xf32>
    %10 = vector.broadcast %3 : vector<1x128xf32> to vector<8x128xf32>
    %11 = arith.addf %9, %10 : vector<8x128xf32>
    %cst_9 = arith.constant 0.000000e+00 : f32
    %12 = vector.broadcast %cst_9 : f32 to vector<8x128xf32>
    %13 = arith.maximumf %11, %12 : vector<8x128xf32>
    %14 = arith.truncf %13 : vector<8x128xf32> to vector<8x128xbf16>
    %c0_10 = arith.constant 0 : index
    %c0_11 = arith.constant 0 : index
    %15 = vector.load %arg5[%c0_10, %c0_11] : memref<128x1024xbf16, #tpu.memory_space<vmem>>, vector<128x1024xbf16>
    %cst_12 = arith.constant dense<0.000000e+00> : vector<8x1024xf32>
    %16 = tpu.matmul %14, %15, %cst_12 {dimension_numbers = #tpu.dot_dimension_numbers<[1], [0], [0], [1], [0, 0, 1, 1], [], []>} : vector<8x128xbf16>, vector<128x1024xbf16>, vector<8x1024xf32> -> vector<8x1024xf32>
    %17 = vector.broadcast %4 : vector<1x1024xf32> to vector<8x1024xf32>
    %18 = arith.addf %16, %17 : vector<8x1024xf32>
    %c8_i32 = arith.constant 8 : i32
    %19 = arith.muli %arg1, %c8_i32 : i32
    %20 = tpu.iota {dimensions = array<i32: 0>} : vector<8x1xi32>
    %21 = vector.broadcast %19 : i32 to vector<8x1xi32>
    %22 = arith.addi %21, %20 : vector<8x1xi32>
    %c8_i32_13 = arith.constant 8 : i32
    %23 = vector.broadcast %c8_i32_13 : i32 to vector<8x1xi32>
    %24 = arith.cmpi slt, %22, %23 : vector<8x1xi32>
    %cst_14 = arith.constant 0xFF800000 : f32
    %25 = vector.shape_cast %24 : vector<8x1xi1> to vector<8x1xi1>
    %26 = vector.broadcast %25 : vector<8x1xi1> to vector<8x1024xi1>
    %27 = vector.broadcast %cst_14 : f32 to vector<8x1024xf32>
    %28 = arith.select %26, %18, %27 : vector<8x1024xi1>, vector<8x1024xf32>
    %cst_15 = arith.constant dense<0xFF800000> : vector<1024xf32>
    %29 = vector.multi_reduction <maximumf>, %28, %cst_15 [0] : vector<8x1024xf32> to vector<1024xf32>
    %30 = vector.shape_cast %29 : vector<1024xf32> to vector<1x1024xf32>
    %31 = vector.shape_cast %30 : vector<1x1024xf32> to vector<1x1x1024xf32>
    %c0_16 = arith.constant 0 : index
    %c0_17 = arith.constant 0 : index
    %c0_18 = arith.constant 0 : index
    %32 = vector.load %arg7[%c0_16, %c0_17, %c0_18] : memref<1x1x1024xf32, #tpu.memory_space<vmem>>, vector<1x1x1024xf32>
    %33 = arith.maximumf %32, %31 : vector<1x1x1024xf32>
    %c0_19 = arith.constant 0 : index
    %c0_20 = arith.constant 0 : index
    %c0_21 = arith.constant 0 : index
    %34 = vector.load %arg7[%c0_19, %c0_20, %c0_21] : memref<1x1x1024xf32, #tpu.memory_space<vmem>>, vector<1x1x1024xf32>
    tpu.vector_store %arg7[%c0_19, %c0_20, %c0_21], %33 {strides = array<i32>} : memref<1x1x1024xf32, #tpu.memory_space<vmem>>, vector<1x1x1024xf32>,
    return
  }
  func.func @transform_0(%arg0: i32, %arg1: i32) -> (i32, i32, i32) {
    %c0_i32 = arith.constant 0 : i32
    %c0_i32_0 = arith.constant 0 : i32
    return %arg0, %arg1, %c0_i32 : i32, i32, i32
  }
  func.func @transform_1(%arg0: i32, %arg1: i32) -> (i32, i32) {
    %c0_i32 = arith.constant 0 : i32
    %c0_i32_0 = arith.constant 0 : i32
    %c0_i32_1 = arith.constant 0 : i32
    return %c0_i32, %c0_i32_0 : i32, i32
  }
  func.func @transform_2(%arg0: i32, %arg1: i32) -> (i32, i32) {
    %c0_i32 = arith.constant 0 : i32
    %c0_i32_0 = arith.constant 0 : i32
    %c0_i32_1 = arith.constant 0 : i32
    return %c0_i32, %c0_i32_0 : i32, i32
  }
  func.func @transform_3(%arg0: i32, %arg1: i32) -> (i32, i32) {
    %c0_i32 = arith.constant 0 : i32
    %c0_i32_0 = arith.constant 0 : i32
    %c0_i32_1 = arith.constant 0 : i32
    return %c0_i32, %c0_i32_0 : i32, i32
  }
  func.func @transform_4(%arg0: i32, %arg1: i32) -> (i32, i32) {
    %c0_i32 = arith.constant 0 : i32
    %c0_i32_0 = arith.constant 0 : i32
    %c0_i32_1 = arith.constant 0 : i32
    return %c0_i32, %c0_i32_0 : i32, i32
  }
  func.func @transform_5(%arg0: i32, %arg1: i32) -> (i32, i32, i32) {
    %c0_i32 = arith.constant 0 : i32
    %c0_i32_0 = arith.constant 0 : i32
    %c0_i32_1 = arith.constant 0 : i32
    return %arg0, %c0_i32, %c0_i32_0 : i32, i32, i32
  }
}

</mosaic_0001>

<bundles_post_ra>
// kernel: tpu_custom_call.1
= control target key start
LH: loop header
LB: loop body
LE: loop exit
PB: predicated region body
PF: predicated region fallthrough
CT: control target
= control target key end

     0   :  { %10 = vsyncpa [#allocation3], 0  ;;  %s2187_s0 = inlined_call_operand.hbm [shape: f32[2,8,384], index: 0, kind: input, shape index: {}]   ;;  %s2188_s1 = inlined_call_operand.hbm [shape: bf16[384,128], index: 1, kind: input, shape index: {}]   ;;  %s2189_s2 = inlined_call_operand.vmem [shape: f32[1,128], index: 2, kind: input, shape index: {}]   ;;  %s2190_s3 = inlined_call_operand.hbm [shape: bf16[128,1024], index: 3, kind: input, shape index: {}]   ;;  %s2191_s4 = inlined_call_operand.vmem [shape: f32[1,1024], index: 4, kind: input, shape index: {}]   ;;  %s2192_s5 = inlined_call_operand.hbm [shape: f32[2,1,1024], index: 5, kind: output, shape index: {}]  }
   0x1   :  { %12 = vsyncpa [#allocation3 + $0x1], 0 }
   0x2   :  { %13 = vsyncpa [#allocation6], 0 }
   0x3   :  { %14 = vsyncpa [#allocation4], 0 }
   0x4   :  { %16 = vsyncpa [#allocation4 + $0x1], 0  ;;  %s1901_s18 = smov 0   ;;  %s1903_s19 = smov 0  }
   0x5   :  { %s1905_s20 = smov 0   ;;  %s1907_s21 = smov 0  }
   0x6   :  { %s1909_s22 = smov 0   ;;  %s1911_s23 = smov 0  }
   0x7 LB: > { %s1409_s24 = sadd.s32 4294967295, %s1857_s23   ;;  %s1410_s25 = sadd.s32 4294967294, %s1857_s23   ;;  %s1857_s23 = sphi %s1911_s23, %s22_s23   ;;  %s1853_s22 = sphi %s1909_s22, %s2214_s22   ;;  %s1849_s21 = sphi %s1907_s21, %s2213_s21   ;;  %s1845_s20 = sphi %s1905_s20, %s2212_s20   ;;  %s1841_s19 = sphi %s1903_s19, %s2211_s19   ;;  %s1837_s18 = sphi %s1901_s18, %s2210_s18  }
   0x8   : > { %p56_p0 = scmp.ne.s32.totalorder %s1841_s19, %s1837_s18  ;;  %p1935_p1 = scmp.eq.s32.totalorder %s1409_s24, 0 }
   0x9   : > { %p1939_p2 = scmp.eq.s32.totalorder %s1409_s24, 1  ;;  %p170_p3 = scmp.eq.s32.totalorder %s1410_s25, 1 }
   0xa   : > { %s2197_s26 = scalar_select %p1935_p1, 1, 0 }
   0xb   : > { %p1945_p4 = por %p1935_p1, %p56_p0  ;;  %p1411_p5 = scmp.ge.s32.totalorder %s1857_s23, 1 }
   0xc   : > { %p1950_p6 = por %p170_p3, %p56_p0  ;;  %p177_p7 = scmp.lt.s32.totalorder %s1857_s23, 3 }
   0xd   : > { %s2199_s28 = scalar_select %p1945_p4, 1, 0 }
   0xe   : > { %s2200_s29 = scalar_select %p1950_p6, 1, 0 }
   0xf   : > { %p1955_p8 = pnand %p1411_p5, %p177_p7  ;;  %s1859_s6 = smov [#allocation5]  }
  0x10   : > { %s189_s7 = sshll.u32 %s1859_s6, 4  ;;  %s1860_s9 = smov [#allocation7]   ;;  %s1959_s7 = int_to_ptr.vmem [resolvable:$true] %s189_s7 }
  0x11   : > { %p1581_p9 = pneg %p1955_p8  ;;  %s205_s10 = sshll.u32 %s1860_s9, 4  ;;  %s1970_s10 = int_to_ptr.vmem [resolvable:$true] %s205_s10 }
  0x12   : > { %s1685_s13 = scalar_lea.hbm %s2188_s1, 3072 }
  0x13   : > { %p1966_p11 = pnand %p1581_p9, %p1935_p1  ;;  %p1686_p12 = scmp.ne.s32.totalorder %s2188_s1, %s1685_s13 }
  0x14   : > { %p1692_p5 = scmp.lt.u32.totalorder %s1685_s13, %s2188_s1 }
  0x15   : > { %p1687_p13 = pneg %p1966_p11 }
  0x17   : > { %p1688_p0 = pnand %p1687_p13, %p1686_p12 }
  0x19   : > { %p1689_p3 = pneg %p1688_p0 }
  0x1b   : > { %p1694_p7 = pnand %p1692_p5, %p1689_p3 }
  0x1d   : > { %1697 = shalt.err (!%p1694_p7)
}
  0x1e   : > { %s1698_s24 = scalar_lea.vmem %s1959_s7, 3072  ;;  %p1706_p1 = scmp.lt.s32.totalorder %s1959_s7, %s1959_s7 }
  0x1f   : > { %p1699_p9 = scmp.ne.s32.totalorder %s1959_s7, %s1698_s24  ;;  %p1707_p12 = scmp.lt.s32.totalorder %s1698_s24, %s1698_s24 }
  0x21   : > { %p1701_p10 = pnand %p1699_p9, %p1687_p13  ;;  %p1708_p0 = por %p1707_p12, %p1706_p1 }
  0x23   : > { %p1702_p6 = pneg %p1701_p10 }
  0x25   : > { %p1709_p4 = pnand %p1708_p0, %p1702_p6 }
  0x27   : > { %1712 = shalt.err (!%p1709_p4)
}
  0x28   : > { %s1861_s25 = smov 64   ;;  %s1862_s6 = smov 4  }
  0x29   : > { %1584 = dma.hbm_to_vmem [thread:$0]  (!%p1966_p11), %s2188_s1, 3072, %s1959_s7, [#allocation6], %s1861_s25, %s1861_s25, %s1862_s6  }
  0x2a   : > { %s1713_s14 = scalar_lea.hbm %s2190_s3, 8192 }
  0x2b   : > { %p1714_p1 = scmp.ne.s32.totalorder %s2190_s3, %s1713_s14  ;;  %p1720_p10 = scmp.lt.u32.totalorder %s1713_s14, %s2190_s3 }
  0x2d   : > { %p1716_p4 = pnand %p1714_p1, %p1687_p13 }
  0x2f   : > { %p1717_p6 = pneg %p1716_p4 }
  0x31   : > { %p1722_p3 = pnand %p1720_p10, %p1717_p6 }
  0x33   : > { %1725 = shalt.err (!%p1722_p3)
}
  0x34   : > { %s1726_s7 = scalar_lea.vmem %s1970_s10, 8192  ;;  %p1734_p12 = scmp.lt.s32.totalorder %s1970_s10, %s1970_s10 }
  0x35   : > { %p1727_p5 = scmp.ne.s32.totalorder %s1970_s10, %s1726_s7  ;;  %p1735_p0 = scmp.lt.s32.totalorder %s1726_s7, %s1726_s7 }
  0x37   : > { %p1729_p7 = pnand %p1727_p5, %p1687_p13  ;;  %p1736_p1 = por %p1735_p0, %p1734_p12 }
  0x39   : > { %p1730_p9 = pneg %p1729_p7 }
  0x3b   : > { %p1737_p4 = pnand %p1736_p1, %p1730_p9 }
  0x3d   : > { %1740 = shalt.err (!%p1737_p4)
}
  0x3e   : > { %s1863_s25 = smov 512   ;;  %s1864_s6 = smov 32  }
  0x3f   : > { %1587 = dma.hbm_to_vmem [thread:$0]  (!%p1966_p11), %s2190_s3, 8192, %s1970_s10, [#allocation6], %s1863_s25, %s1863_s25, %s1864_s6  }
  0x40   : > { %s34_s12 = sadd.s32 1, %s1853_s22  ;;  %s43_s13 = sadd.s32 1, %s1845_s20 }
  0x41   : > { %p36_p13 = scmp.ge.s32.totalorder %s34_s12, 2  ;;  %p50_p6 = scmp.ne.s32.totalorder %s1845_s20, %s1841_s19 }
  0x42   : > { %p51_p10 = scmp.eq.s32.totalorder %s1857_s23, 0  ;;  %p1598_p3 = scmp.lt.s32.totalorder %s1857_s23, 2 }
  0x43   : > { %s2216_s12 = smov (%p36_p13, %s34_s12), 0  ;;  %p2034_p7 = por %p1939_p2, %p50_p6 }
  0x44   : > { %p52_p5 = por %p51_p10, %p50_p6  ;;  %s38_s8 = ssub.s32 %s1853_s22, %s2216_s12 }
  0x45   : > { %s2203_s14 = scalar_select %p2034_p7, 1, 0 }
  0x46   : > { %s222_s15 = sand.u32 1, %s1845_s20   ;;  %p41_p9 = scmp.eq.s32.totalorder %s38_s8, 0 }
  0x47   : > { %s1566_s10 = smul.u32 24, %s222_s15  ;;  %p2041_p11 = pnand %p1598_p3, %p52_p5 }
  0x48   : > { %s2046_s17 = scalar_select %p41_p9, %s1845_s20, %s43_s13  }
  0x49   : > { %s1567_s24 = smul.u32 384, %s1853_s22  ;;  %s226_s7 = scalar_lea.vmem [#allocation2], %s1566_s10 }
  0x4a   : > { %s236_s25 = sshll.u32 %s226_s7, 4  ;;  %s223_s11 = scalar_lea.sflag [#allocation3], %s222_s15  ;;  %s2054_s25 = int_to_ptr.vmem [resolvable:$true] %s236_s25 }
  0x4b   : > { %s2052_s9 = scalar_lea.hbm %s2187_s0, %s1567_s24  ;;  %p1743_p12 = pneg %p2041_p11 }
  0x4c   : > { %s1741_s8 = scalar_lea.hbm %s2052_s9, 384  ;;  %s1746_s24 = scalar_lea.hbm %s2187_s0, 768 }
  0x4d   : > { %p1742_p2 = scmp.ne.s32.totalorder %s2052_s9, %s1741_s8  ;;  %p1747_p4 = scmp.lt.u32.totalorder %s2052_s9, %s2187_s0 }
  0x4e   : > { %p1748_p13 = scmp.lt.u32.totalorder %s1746_s24, %s1741_s8  ;;  %p1750_p10 = scmp.lt.u32.totalorder %s1741_s8, %s2052_s9 }
  0x4f   : > { %p1744_p0 = pnand %p1743_p12, %p1742_p2 }
  0x50   : > { %p1749_p6 = por %p1748_p13, %p1747_p4 }
  0x51   : > { %p1745_p1 = pneg %p1744_p0 }
  0x52   : > { %p1751_p3 = por %p1750_p10, %p1749_p6 }
  0x54   : > { %p1752_p5 = pnand %p1751_p3, %p1745_p1 }
  0x56   : > { %1755 = shalt.err (!%p1752_p5)
}
  0x57   : > { %s1756_s15 = scalar_lea.vmem %s2054_s25, 384  ;;  %s1865_s6 = smov [#allocation2]  }
  0x58   : > { %p1757_p9 = scmp.ne.s32.totalorder %s2054_s25, %s1756_s15  ;;  %s1761_s13 = sshll.u32 %s1865_s6, 4  ;;  %s1762_s13 = int_to_ptr.vmem [resolvable:$false] %s1761_s13 }
  0x59   : > { %s1763_s10 = scalar_lea.vmem %s1762_s13, 768  ;;  %p1764_p7 = scmp.lt.s32.totalorder %s2054_s25, %s1762_s13 }
  0x5a   : > { %p1759_p2 = pnand %p1757_p9, %p1743_p12  ;;  %p1765_p4 = scmp.lt.s32.totalorder %s1763_s10, %s1756_s15 }
  0x5c   : > { %p1760_p0 = pneg %p1759_p2  ;;  %p1766_p13 = por %p1765_p4, %p1764_p7 }
  0x5e   : > { %p1767_p6 = pnand %p1766_p13, %p1760_p0 }
  0x60   : > { %1770 = shalt.err (!%p1767_p6)
}
  0x61   : > { %1591 = dma.hbm_to_vmem [thread:$0]  (!%p2041_p11), %s2052_s9, 384, %s2054_s25, %s223_s11  }
  0x62   : > { %245 = sbr.rel (%p1955_p8) target bundleno = 649 (0x289), region = 40  ;;  %s2084_s8 = sand.u32 (!%p1955_p8), 1, %s1841_s19  }
  0x63   : > { %s1568_s24 = smul.u32 (!%p1955_p8), 24, %s2084_s8  ;;  %s248_s7 = scalar_lea.sflag (!%p1955_p8), [#allocation3], %s2084_s8 }
  0x64   : > { %p2205_p7 = scmp.ne.s32.totalorder (!%p1955_p8), %s2199_s28, 0 }
  0x65   : > { %s2088_s27 = scalar_lea.vmem (!%p1955_p8), [#allocation2], %s1568_s24 }
  0x69   : > { %1824 = dma.done.wait (%p2205_p7), %s248_s7, 384  }
  0x6a   : > { %1826 = vsyncadd (%p2205_p7), %s248_s7, 4294966912  ;;  %p2206_p11 = scmp.ne.s32.totalorder %s2197_s26, 0 }
  0x6c   : > { %1828 = dma.done.wait (%p2206_p11), [#allocation6], 11264  }
  0x6d   : > { %1830 = vsyncadd (%p2206_p11), [#allocation6], 4294956032  ;;  %v1866_v0 = vmov 0.0   ;;  %vm1867_vm0 = vmmov 0   ;;  %v1661_v1 = vld [vmem:[#allocation5 + $0x40] sm:$0xff]   ;;  %v1664_v4 = vld [vmem:[#allocation5 + $0x48] sm:$0xff]  }
  0x6e   : > { %1546 = vmatprep.subr.bf16.mxu1 %v1866_v0  ;;  %1562 = vmatprep.mubr.msk.bf16.mxu1 %vm1867_vm0, %v1866_v0  ;;  %v1662_v2 = vld [vmem:[#allocation5] sm:$0xff]   ;;  %v1665_v5 = vld [vmem:[#allocation5 + $0x8] sm:$0xff]   ;;  %v1667_v7 = vld [vmem:[#allocation5 + $0x50] sm:$0xff]   ;;  %s1419_s25 = sshll.u32 %s2084_s8, 3  ;;  %s1514_s9 = sshll.u32 %s1849_s21, 7 }
  0x6f   : > { %1515 = vmatprep.subr.bf16.mxu0 %v1661_v1  ;;  %v1663_v3 = vld [vmem:[#allocation5 + $0x80] sm:$0xff]   ;;  %v1666_v6 = vld [vmem:[#allocation5 + $0x88] sm:$0xff]   ;;  %v1668_v8 = vld [vmem:[#allocation5 + $0x10] sm:$0xff]   ;;  %s285_s11 = scalar_lea.vmem [#allocation8], %s1419_s25  ;;  %s2138_s10 = scalar_lea.hbm %s2192_s5, %s1514_s9 }
  0x70   : > { %1516 = vmatpush3.bf16.msra.mxu0 %v1662_v2  ;;  %1547 = vmatpush3.bf16.msra.mxu1 %v1663_v3  ;;  %v1669_v9 = vld [vmem:[#allocation5 + $0x90] sm:$0xff]   ;;  %v1670_v10 = vld [vmem:[#allocation5 + $0x58] sm:$0xff]   ;;  %v1673_v13 = vld [vmem:[#allocation5 + $0x60] sm:$0xff]   ;;  %s1309_s15 = sshll.u32 %s285_s11, 4  ;;  %s1295_s24 = scalar_lea.sflag [#allocation4], %s2084_s8  ;;  %s2140_s15 = int_to_ptr.vmem [resolvable:$true] %s1309_s15 }
  0x71   : > { %1517 = vmatprep.subr.bf16.mxu0 %v1664_v4  ;;  %1548 = vmatprep.subr.bf16.mxu1 %v1866_v0  ;;  %v1671_v11 = vld [vmem:[#allocation5 + $0x18] sm:$0xff]   ;;  %v1674_v14 = vld [vmem:[#allocation5 + $0x20] sm:$0xff]   ;;  %v1676_v16 = vld [vmem:[#allocation5 + $0x68] sm:$0xff]   ;;  %s1771_s7 = scalar_lea.vmem %s2140_s15, 128  ;;  %p2207_p12 = scmp.ne.s32.totalorder %s2203_s14, 0 }
  0x72   : > { %v1672_v12 = vld [vmem:[#allocation5 + $0x98] sm:$0xff]   ;;  %v1675_v15 = vld [vmem:[#allocation5 + $0xa0] sm:$0xff]   ;;  %v1677_v17 = vld [vmem:[#allocation5 + $0x28] sm:$0xff]   ;;  %p1772_p8 = scmp.ne.s32.totalorder %s2140_s15, %s1771_s7  ;;  %s1870_s21 = smov [#allocation8]  }
  0x73   : > { %v1678_v18 = vld [vmem:[#allocation5 + $0xa8] sm:$0xff]   ;;  %v1679_v19 = vld [vmem:[#allocation5 + $0x70] sm:$0xff]   ;;  %v1682_v23 = vld [vmem:[#allocation5 + $0x78] sm:$0xff]  }
  0x74   : > { %1518 = vmatpush3.bf16.msra.mxu0 %v1665_v5  ;;  %1549 = vmatpush3.bf16.msra.mxu1 %v1666_v6  ;;  %v1680_v20 = vld [vmem:[#allocation5 + $0x30] sm:$0xff]   ;;  %v580_v25 = vld [vmem:[#allocation7] sm:$0xff]  ;;  %v581_v27 = vld [vmem:[#allocation7 + $0x8] sm:$0xff]  ;;  %p1773_p1 = pnand %p1772_p8, %p2207_p12 }
  0x75   : > { %1519 = vmatprep.subr.bf16.mxu0 %v1667_v7  ;;  %1550 = vmatprep.subr.bf16.mxu1 %v1866_v0  ;;  %v295_v21 = vld [vmem:[%s2088_s27 + $0x8] sm:$0xff]  ;;  %v584_v26 = vld [vmem:[#allocation7 + $0x20] sm:$0xff]  ;;  %v585_v28 = vld [vmem:[#allocation7 + $0x28] sm:$0xff] }
  0x76   : > { %v1681_v22 = vld [vmem:[#allocation5 + $0xb0] sm:$0xff]   ;;  %v298_v24 = vpack.c.bf16 %v295_v21, %v295_v21  ;;  %v1683_v29 = vld [vmem:[#allocation5 + $0x38] sm:$0xff]   ;;  %v1446_v33 = vcombine.high %v580_v25, %v584_v26  ;;  %v1448_v34 = vcombine.high %v581_v27, %v585_v28  ;;  %v588_v35 = vld [vmem:[#allocation7 + $0x40] sm:$0xff]  ;;  %v1445_v41 = vcombine.low %v580_v25, %v584_v26  ;;  %p1774_p10 = pneg %p1773_p1 }
  0x77   : > { %v294_v30 = vld [vmem:[%s2088_s27] sm:$0xff]  ;;  %v1684_v31 = vld [vmem:[#allocation5 + $0xb8] sm:$0xff]   ;;  %v592_v36 = vld [vmem:[#allocation7 + $0x60] sm:$0xff]  ;;  %v1447_v42 = vcombine.low %v581_v27, %v585_v28 }
  0x78   : > { %1520 = vmatpush3.bf16.msra.mxu0 %v1668_v8  ;;  %1551 = vmatpush3.bf16.msra.mxu1 %v1669_v9  ;;  %v296_v32 = vld [vmem:[%s2088_s27 + $0x10] sm:$0xff]  ;;  %v297_v37 = vpack.c.bf16 %v294_v30, %v294_v30  ;;  %v589_v38 = vld [vmem:[#allocation7 + $0x48] sm:$0xff]  ;;  %v1454_v43 = vcombine.high %v588_v35, %v592_v36  ;;  %v1453_v49 = vcombine.low %v588_v35, %v592_v36  ;;  %s1775_s27 = sshll.u32 %s1870_s21, 4  ;;  %s1776_s27 = int_to_ptr.vmem [resolvable:$false] %s1775_s27 }
  0x79   : > { %1521 = vmatprep.subr.bf16.mxu0 %v1670_v10  ;;  %1552 = vmatprep.subr.bf16.mxu1 %v1866_v0  ;;  %v593_v39 = vld [vmem:[#allocation7 + $0x68] sm:$0xff]  ;;  %v299_v40 = vpack.c.bf16 %v296_v32, %v296_v32  ;;  %v596_v45 = vld [vmem:[#allocation7 + $0x80] sm:$0xff]  ;;  %v586_v32 = vld [vmem:[#allocation7 + $0x30] sm:$0xff]  ;;  %s1777_s26 = scalar_lea.vmem %s1776_s27, 256  ;;  %p1778_p3 = scmp.lt.s32.totalorder %s2140_s15, %s1776_s27 }
  0x7a   : > { %530 = vmatprep.mubr.bf16.mxu0 %v298_v24  ;;  %v1456_v44 = vcombine.high %v589_v38, %v593_v39  ;;  %v600_v46 = vld [vmem:[#allocation7 + $0xa0] sm:$0xff]  ;;  %v597_v47 = vld [vmem:[#allocation7 + $0x88] sm:$0xff]  ;;  %v1455_v50 = vcombine.low %v589_v38, %v593_v39  ;;  %v587_v35 = vld [vmem:[#allocation7 + $0x38] sm:$0xff]  ;;  %v1868_v39 = vmov 0   ;;  %p1779_p5 = scmp.lt.s32.totalorder %s1777_s26, %s1771_s7 }
  0x7b   : > { %v601_v48 = vld [vmem:[#allocation7 + $0xa8] sm:$0xff]  ;;  %v1462_v51 = vcombine.high %v596_v45, %v600_v46  ;;  %v604_v53 = vld [vmem:[#allocation7 + $0xc0] sm:$0xff]  ;;  %v1461_v57 = vcombine.low %v596_v45, %v600_v46 }
  0x7c   : > { %1522 = vmatpush3.bf16.msra.mxu0 %v1671_v11  ;;  %1553 = vmatpush3.bf16.msra.mxu1 %v1672_v12  ;;  %v1464_v52 = vcombine.high %v597_v47, %v601_v48  ;;  %v608_v54 = vld [vmem:[#allocation7 + $0xe0] sm:$0xff]  ;;  %v605_v55 = vld [vmem:[#allocation7 + $0xc8] sm:$0xff]  ;;  %v1463_v58 = vcombine.low %v597_v47, %v601_v48  ;;  %p1780_p9 = por %p1779_p5, %p1778_p3 }
  0x7d   : > { %1523 = vmatprep.subr.bf16.mxu0 %v1673_v13  ;;  %1554 = vmatprep.subr.bf16.mxu1 %v1866_v0  ;;  %v609_v56 = vld [vmem:[#allocation7 + $0xe8] sm:$0xff]  ;;  %v1470_v59 = vcombine.high %v604_v53, %v608_v54  ;;  %v612_v61 = vld [vmem:[#allocation7 + $0x100] sm:$0xff]  ;;  %v1469_v1 = vcombine.low %v604_v53, %v608_v54  ;;  %v594_v53 = vld [vmem:[#allocation7 + $0x70] sm:$0xff] }
  0x7e   : > { %v1472_v60 = vcombine.high %v605_v55, %v609_v56  ;;  %v616_v62 = vld [vmem:[#allocation7 + $0x120] sm:$0xff]  ;;  %v613_v63 = vld [vmem:[#allocation7 + $0x108] sm:$0xff]  ;;  %v1471_v2 = vcombine.low %v605_v55, %v609_v56  ;;  %v591_v54 = vld [vmem:[#allocation7 + $0x58] sm:$0xff]  ;;  %p1781_p2 = pnand %p1780_p9, %p1774_p10 }
  0x7f   : > { %v1478_v3 = vcombine.high %v612_v61, %v616_v62  ;;  %v620_v5 = vld [vmem:[#allocation7 + $0x140] sm:$0xff]  ;;  %v621_v7 = vld [vmem:[#allocation7 + $0x148] sm:$0xff]  ;;  %v1477_v9 = vcombine.low %v612_v61, %v616_v62  ;;  %v595_v55 = vld [vmem:[#allocation7 + $0x78] sm:$0xff] }
  0x80   : > { %1524 = vmatpush3.bf16.msra.mxu0 %v1674_v14  ;;  %1555 = vmatpush3.bf16.msra.mxu1 %v1675_v15  ;;  %v624_v6 = vld [vmem:[#allocation7 + $0x160] sm:$0xff]  ;;  %v625_v8 = vld [vmem:[#allocation7 + $0x168] sm:$0xff]  ;;  %v602_v61 = vld [vmem:[#allocation7 + $0xb0] sm:$0xff] }
  0x81   : > { %1525 = vmatprep.subr.bf16.mxu0 %v1676_v16  ;;  %1556 = vmatprep.subr.bf16.mxu1 %v1866_v0  ;;  %v1486_v11 = vcombine.high %v620_v5, %v624_v6  ;;  %v1488_v12 = vcombine.high %v621_v7, %v625_v8  ;;  %v1485_v13 = vcombine.low %v620_v5, %v624_v6  ;;  %v628_v15 = vld [vmem:[#allocation7 + $0x180] sm:$0xff]  ;;  %v637_v25 = vld [vmem:[#allocation7 + $0x1c8] sm:$0xff]  ;;  %v599_v62 = vld [vmem:[#allocation7 + $0x98] sm:$0xff] }
  0x82   : > { %v1487_v14 = vcombine.low %v621_v7, %v625_v8  ;;  %v632_v16 = vld [vmem:[#allocation7 + $0x1a0] sm:$0xff]  ;;  %v641_v27 = vld [vmem:[#allocation7 + $0x1e8] sm:$0xff]  ;;  %v610_v5 = vld [vmem:[#allocation7 + $0xf0] sm:$0xff] }
  0x83   : > { %v640_v24 = vld [vmem:[#allocation7 + $0x1e0] sm:$0xff]  ;;  %v1504_v30 = vcombine.high %v637_v25, %v641_v27  ;;  %v607_v6 = vld [vmem:[#allocation7 + $0xd8] sm:$0xff] }
  0x84   : > { %1526 = vmatpush3.bf16.msra.mxu0 %v1677_v17  ;;  %1557 = vmatpush3.bf16.msra.mxu1 %v1678_v18  ;;  %v629_v17 = vld [vmem:[#allocation7 + $0x188] sm:$0xff]  ;;  %v1494_v18 = vcombine.high %v628_v15, %v632_v16  ;;  %v611_v7 = vld [vmem:[#allocation7 + $0xf8] sm:$0xff] }
  0x85   : > { %1527 = vmatprep.subr.bf16.mxu0 %v1679_v19  ;;  %1558 = vmatprep.subr.bf16.mxu1 %v1866_v0  ;;  %v633_v19 = vld [vmem:[#allocation7 + $0x1a8] sm:$0xff] }
  0x86   : > { %v1495_v21 = vcombine.low %v629_v17, %v633_v19 }
  0x88   : > { %1528 = vmatpush3.bf16.msra.mxu0 %v1680_v20  ;;  %1559 = vmatpush3.bf16.msra.mxu1 %v1681_v22  ;;  %v1493_v20 = vcombine.low %v628_v15, %v632_v16  ;;  %v1496_v22 = vcombine.high %v629_v17, %v633_v19  ;;  %v619_v15 = vld [vmem:[#allocation7 + $0x138] sm:$0xff]  ;;  %v1475_v17 = vcombine.low %v607_v6, %v611_v7 }
  0x89   : > { %1529 = vmatprep.subr.bf16.mxu0 %v1682_v23  ;;  %1560 = vmatprep.subr.bf16.mxu1 %v1866_v0  ;;  %v617_v0 = vld [vmem:[#allocation7 + $0x128] sm:$0xff]  ;;  %v636_v23 = vld [vmem:[#allocation7 + $0x1c0] sm:$0xff] }
  0x8a   : > { %v1480_v4 = vcombine.high %v613_v63, %v617_v0  ;;  %v1479_v10 = vcombine.low %v613_v63, %v617_v0  ;;  %v1502_v26 = vcombine.high %v636_v23, %v640_v24  ;;  %v1501_v28 = vcombine.low %v636_v23, %v640_v24  ;;  %v603_v63 = vld [vmem:[#allocation7 + $0xb8] sm:$0xff] }
  0x8b   : > { %v627_v23 = vld [vmem:[#allocation7 + $0x178] sm:$0xff] }
  0x8c   : > { %1530 = vmatpush3.bf16.msra.mxu0 %v1683_v29  ;;  %1561 = vmatpush3.bf16.msra.mxu1 %v1684_v31  ;;  %v1503_v29 = vcombine.low %v637_v25, %v641_v27  ;;  %v582_v31 = vld [vmem:[#allocation7 + $0x10] sm:$0xff] }
  0x8d   : > { %1005 = vmatprep.subr.bf16.mxu0 %v1446_v33  ;;  %1046 = vmatprep.subr.bf16.mxu1 %v1448_v34  ;;  %v583_v33 = vld [vmem:[#allocation7 + $0x18] sm:$0xff]  ;;  %v1450_v34 = vcombine.high %v582_v31, %v586_v32  ;;  %v1449_v36 = vcombine.low %v582_v31, %v586_v32 }
  0x8e   : > { %v1452_v38 = vcombine.high %v583_v33, %v587_v35  ;;  %v635_v31 = vld [vmem:[#allocation7 + $0x1b8] sm:$0xff] }
  0x8f   : > { %531 = vmatmul.mubr.bf16.vlgmr.msra.gmra.mrb[0].mxu0 %v297_v37  ;;  %1563 = vmatmul.mubr.bf16.vlgmr.msra.gmra.mrb[0].mxu1 %v299_v40  ;;  %v1451_v37 = vcombine.low %v583_v33, %v587_v35 }
  0x90   : > { %1006 = vmatpush1.bf16.msra.mxu0 %v1445_v41  ;;  %1047 = vmatpush1.bf16.msra.mxu1 %v1447_v42  ;;  %v1420_v42 = vld [vmem:[%s2189_s2] ss:$0 sm:$0xff] }
  0x91   : > { %1007 = vmatprep.subr.bf16.mxu0 %v1454_v43  ;;  %1048 = vmatprep.subr.bf16.mxu1 %v1456_v44 }
  0x92   : > { %1037 = vmatprep.mubr.bf16.mxu0 %v1868_v39  ;;  %1078 = vmatprep.mubr.bf16.mxu1 %v1868_v39 }
  0x94   : > { %1008 = vmatpush1.bf16.msra.mxu0 %v1453_v49  ;;  %1049 = vmatpush1.bf16.msra.mxu1 %v1455_v50 }
  0x95   : > { %1009 = vmatprep.subr.bf16.mxu0 %v1462_v51  ;;  %1050 = vmatprep.subr.bf16.mxu1 %v1464_v52  ;;  %v590_v52 = vld [vmem:[#allocation7 + $0x50] sm:$0xff] }
  0x96   : > { %v1457_v0 = vcombine.low %v590_v52, %v594_v53 }
  0x98   : > { %1010 = vmatpush1.bf16.msra.mxu0 %v1461_v57  ;;  %1051 = vmatpush1.bf16.msra.mxu1 %v1463_v58  ;;  %v1458_v58 = vcombine.high %v590_v52, %v594_v53 }
  0x99   : > { %1011 = vmatprep.subr.bf16.mxu0 %v1470_v59  ;;  %1052 = vmatprep.subr.bf16.mxu1 %v1472_v60  ;;  %v1460_v59 = vcombine.high %v591_v54, %v595_v55  ;;  %v598_v60 = vld [vmem:[#allocation7 + $0x90] sm:$0xff] }
  0x9a   : > { %v1465_v8 = vcombine.low %v598_v60, %v602_v61 }
  0x9c   : > { %1012 = vmatpush1.bf16.msra.mxu0 %v1469_v1  ;;  %1053 = vmatpush1.bf16.msra.mxu1 %v1471_v2  ;;  %v1459_v1 = vcombine.low %v591_v54, %v595_v55  ;;  %v1466_v2 = vcombine.high %v598_v60, %v602_v61 }
  0x9d   : > { %1013 = vmatprep.subr.bf16.mxu0 %v1478_v3  ;;  %1054 = vmatprep.subr.bf16.mxu1 %v1480_v4  ;;  %v1468_v3 = vcombine.high %v599_v62, %v603_v63  ;;  %v606_v4 = vld [vmem:[#allocation7 + $0xd0] sm:$0xff] }
  0x9e   : > { %v1473_v16 = vcombine.low %v606_v4, %v610_v5 }
  0xa0   : > { %1014 = vmatpush1.bf16.msra.mxu0 %v1477_v9  ;;  %1055 = vmatpush1.bf16.msra.mxu1 %v1479_v10  ;;  %v1467_v9 = vcombine.low %v599_v62, %v603_v63  ;;  %v1474_v10 = vcombine.high %v606_v4, %v610_v5 }
  0xa1   : > { %1015 = vmatprep.subr.bf16.mxu0 %v1486_v11  ;;  %1056 = vmatprep.subr.bf16.mxu1 %v1488_v12  ;;  %v1476_v11 = vcombine.high %v607_v6, %v611_v7  ;;  %v614_v12 = vld [vmem:[#allocation7 + $0x110] sm:$0xff] }
  0xa4   : > { %1016 = vmatpush1.bf16.msra.mxu0 %v1485_v13  ;;  %1057 = vmatpush1.bf16.msra.mxu1 %v1487_v14  ;;  %v618_v13 = vld [vmem:[#allocation7 + $0x130] sm:$0xff]  ;;  %v615_v14 = vld [vmem:[#allocation7 + $0x118] sm:$0xff] }
  0xa5   : > { %1017 = vmatprep.subr.bf16.mxu0 %v1494_v18  ;;  %1058 = vmatprep.subr.bf16.mxu1 %v1496_v22  ;;  %v1482_v18 = vcombine.high %v614_v12, %v618_v13  ;;  %v1484_v19 = vcombine.high %v615_v14, %v619_v15  ;;  %v623_v22 = vld [vmem:[#allocation7 + $0x158] sm:$0xff]  ;;  %v1481_v24 = vcombine.low %v614_v12, %v618_v13  ;;  %v1869_v12 = vmov 1966171168  }
  0xa6   : > { %v1483_v25 = vcombine.low %v615_v14, %v619_v15  ;;  %v1492_v27 = vcombine.high %v623_v22, %v627_v23  ;;  %v1491_v33 = vcombine.low %v623_v22, %v627_v23  ;;  %v1247_v13 = vunpack.c.l.s4 %v1869_v12 }
  0xa8   : > { %1018 = vmatpush1.bf16.msra.mxu0 %v1493_v20  ;;  %1059 = vmatpush1.bf16.msra.mxu1 %v1495_v21  ;;  %v622_v20 = vld [vmem:[#allocation7 + $0x150] sm:$0xff]  ;;  %v1248_v22 = vunpack.c.0.s8 %v1247_v13 }
  0xa9   : > { %1019 = vmatprep.subr.bf16.mxu0 %v1502_v26  ;;  %1060 = vmatprep.subr.bf16.mxu1 %v1504_v30  ;;  %v626_v21 = vld [vmem:[#allocation7 + $0x170] sm:$0xff]  ;;  %v631_v30 = vld [vmem:[#allocation7 + $0x198] sm:$0xff] }
  0xaa   : > { %v1490_v26 = vcombine.high %v622_v20, %v626_v21  ;;  %v1489_v32 = vcombine.low %v622_v20, %v626_v21  ;;  %v1500_v35 = vcombine.high %v631_v30, %v635_v31 }
  0xac   : > { %1020 = vmatpush1.bf16.msra.mxu0 %v1501_v28  ;;  %1061 = vmatpush1.bf16.msra.mxu1 %v1503_v29  ;;  %v630_v28 = vld [vmem:[#allocation7 + $0x190] sm:$0xff] }
  0xad   : > { %1087 = vmatprep.subr.bf16.mxu0 %v1450_v34  ;;  %1128 = vmatprep.subr.bf16.mxu1 %v1452_v38  ;;  %v634_v29 = vld [vmem:[#allocation7 + $0x1b0] sm:$0xff]  ;;  %v639_v38 = vld [vmem:[#allocation7 + $0x1d8] sm:$0xff] }
  0xae   : > { %v1498_v34 = vcombine.high %v630_v28, %v634_v29 }
 0x162   : > { %v1531_v40 = vpop.f32.mrb[0].mxu0  ;;  %v572_v43 = vpop.f32.mrb[0].mxu1 }
 0x163   : > { %v1532_v41 = vpop.f32.mrb[1].mxu0  ;;  %v1564_v46 = vpop.f32.mrb[1].mxu1 }
 0x164   : > { %v1533_v44 = vadd.f32 %v1532_v41, %v1531_v40  ;;  %v1534_v45 = vpop.f32.mrb[2].mxu0  ;;  %v575_v48 = vpop.f32.mrb[2].mxu1  ;;  %v1497_v40 = vcombine.low %v630_v28, %v634_v29  ;;  %v1499_v41 = vcombine.low %v631_v30, %v635_v31  ;;  %v645_v46 = vlaneseq }
 0x165   : > { %v1535_v47 = vpop.f32.mrb[3].mxu0  ;;  %v1565_v50 = vpop.f32.mrb[3].mxu1 }
 0x166   : > { %v533_v49 = vadd.f32 %v1533_v44, %v1420_v42  ;;  %v2119_v47 = vshrl.u32 %v645_v46, 7  ;;  %v293_v50 = vld [vmem:[%s2191_s4] sm:$0xff] }
 0x168   : > { %v573_v51 = vadd.f32 %v572_v43, %v533_v49  ;;  %v647_v48 = vsub.s32 0, %v2119_v47  ;;  %v655_v49 = vsub.s32 2, %v2119_v47  ;;  %v659_v52 = vsub.s32 3, %v2119_v47 }
 0x169   : > { %v1251_v31 = vsub.s32 %v1248_v22, %v2119_v47 }
 0x16a   : > { %v578_v56 = vmax.f32 %v573_v51, 0.0  ;;  %v651_v51 = vsub.s32 1, %v2119_v47  ;;  %v648_v53 = vrot.slane %v293_v50, %v647_v48  ;;  %v656_v54 = vrot.slane %v293_v50, %v655_v49 }
 0x16c   : > { %v2113_v57 = vpack.c.bf16 %v578_v56, %v578_v56  ;;  %v652_v55 = vrot.slane %v293_v50, %v651_v51  ;;  %v660_v56 = vrot.slane %v293_v50, %v659_v52 }
 0x16e   : > { %1038 = vmatmul.mubr.bf16.vlgmr.msra.gmra.mrb[4].mxu0 %v2113_v57  ;;  %1079 = vmatmul.mubr.bf16.vlgmr.msra.gmra.mrb[4].mxu1 %v2113_v57 }
 0x16f   : > { %1088 = vmatpush1.bf16.msra.mxu0 %v1449_v36  ;;  %1129 = vmatpush1.bf16.msra.mxu1 %v1451_v37  ;;  %v638_v36 = vld [vmem:[#allocation7 + $0x1d0] sm:$0xff] }
 0x170   : > { %1089 = vmatprep.subr.bf16.mxu0 %v1458_v58  ;;  %1130 = vmatprep.subr.bf16.mxu1 %v1460_v59  ;;  %v642_v37 = vld [vmem:[#allocation7 + $0x1f0] sm:$0xff] }
 0x171   : > { %1119 = vmatprep.mubr.bf16.mxu0 %v1868_v39  ;;  %1160 = vmatprep.mubr.bf16.mxu1 %v1868_v39  ;;  %v643_v39 = vld [vmem:[#allocation7 + $0x1f8] sm:$0xff]  ;;  %v1506_v42 = vcombine.high %v638_v36, %v642_v37  ;;  %v1505_v44 = vcombine.low %v638_v36, %v642_v37 }
 0x172   : > { %v1508_v43 = vcombine.high %v639_v38, %v643_v39  ;;  %v1507_v45 = vcombine.low %v639_v38, %v643_v39  ;;  %v663_v38 = vsub.s32 4, %v2119_v47  ;;  %v671_v39 = vsub.s32 6, %v2119_v47 }
 0x173   : > { %1090 = vmatpush1.bf16.msra.mxu0 %v1457_v0  ;;  %1131 = vmatpush1.bf16.msra.mxu1 %v1459_v1 }
 0x174   : > { %1091 = vmatprep.subr.bf16.mxu0 %v1466_v2  ;;  %1132 = vmatprep.subr.bf16.mxu1 %v1468_v3 }
 0x177   : > { %1092 = vmatpush1.bf16.msra.mxu0 %v1465_v8  ;;  %1133 = vmatpush1.bf16.msra.mxu1 %v1467_v9 }
 0x178   : > { %1093 = vmatprep.subr.bf16.mxu0 %v1474_v10  ;;  %1134 = vmatprep.subr.bf16.mxu1 %v1476_v11 }
 0x17b   : > { %1094 = vmatpush1.bf16.msra.mxu0 %v1473_v16  ;;  %1135 = vmatpush1.bf16.msra.mxu1 %v1475_v17 }
 0x17c   : > { %1095 = vmatprep.subr.bf16.mxu0 %v1482_v18  ;;  %1136 = vmatprep.subr.bf16.mxu1 %v1484_v19 }
 0x17f   : > { %1096 = vmatpush1.bf16.msra.mxu0 %v1481_v24  ;;  %1137 = vmatpush1.bf16.msra.mxu1 %v1483_v25 }
 0x180   : > { %1097 = vmatprep.subr.bf16.mxu0 %v1490_v26  ;;  %1138 = vmatprep.subr.bf16.mxu1 %v1492_v27 }
 0x183   : > { %1098 = vmatpush1.bf16.msra.mxu0 %v1489_v32  ;;  %1139 = vmatpush1.bf16.msra.mxu1 %v1491_v33 }
 0x184   : > { %1099 = vmatprep.subr.bf16.mxu0 %v1498_v34  ;;  %1140 = vmatprep.subr.bf16.mxu1 %v1500_v35 }
 0x187   : > { %1100 = vmatpush1.bf16.msra.mxu0 %v1497_v40  ;;  %1141 = vmatpush1.bf16.msra.mxu1 %v1499_v41  ;;  %v667_v40 = vsub.s32 5, %v2119_v47  ;;  %v675_v41 = vsub.s32 7, %v2119_v47 }
 0x188   : > { %1101 = vmatprep.subr.bf16.mxu0 %v1506_v42  ;;  %1142 = vmatprep.subr.bf16.mxu1 %v1508_v43  ;;  %v664_v42 = vrot.slane %v293_v50, %v663_v38  ;;  %v672_v43 = vrot.slane %v293_v50, %v671_v39 }
 0x18b   : > { %1102 = vmatpush1.bf16.msra.mxu0 %v1505_v44  ;;  %1143 = vmatpush1.bf16.msra.mxu1 %v1507_v45  ;;  %v668_v44 = vrot.slane %v293_v50, %v667_v40  ;;  %v676_v45 = vrot.slane %v293_v50, %v675_v41 }
 0x18e   : > { %1120 = vmatmul.mubr.bf16.vlgmr.msra.gmra.mrb[8].mxu0 %v2113_v57  ;;  %1161 = vmatmul.mubr.bf16.vlgmr.msra.gmra.mrb[8].mxu1 %v2113_v57 }
 0x241   : > { %v1039_v57 = vpop.f32.mrb[4].mxu0  ;;  %v1080_v58 = vpop.f32.mrb[4].mxu1 }
 0x242   : > { %v1040_v59 = vadd.f32 %v1039_v57, %v648_v53  ;;  %v1081_v60 = vadd.f32 %v1080_v58, %v656_v54  ;;  %v1041_v61 = vpop.f32.mrb[5].mxu0  ;;  %v1082_v62 = vpop.f32.mrb[5].mxu1 }
 0x243   : > { %v1042_v63 = vadd.f32 %v1041_v61, %v652_v55  ;;  %v1083_v0 = vadd.f32 %v1082_v62, %v660_v56  ;;  %v1043_v1 = vpop.f32.mrb[6].mxu0  ;;  %v1084_v2 = vpop.f32.mrb[6].mxu1 }
 0x244   : > { %v1185_v3 = vrot.slane %v1040_v59, 4  ;;  %v1197_v4 = vrot.slane %v1081_v60, 4  ;;  %v1044_v5 = vpop.f32.mrb[7].mxu0  ;;  %v1085_v6 = vpop.f32.mrb[7].mxu1 }
 0x245   : > { %v1191_v7 = vrot.slane %v1042_v63, 4  ;;  %v1203_v8 = vrot.slane %v1083_v0, 4 }
 0x246   : > { %v1186_v9 = vmax.f32 %v1040_v59, %v1185_v3  ;;  %v1198_v10 = vmax.f32 %v1081_v60, %v1197_v4 }
 0x247   : > { %v1192_v11 = vmax.f32 %v1042_v63, %v1191_v7  ;;  %v1204_v14 = vmax.f32 %v1083_v0, %v1203_v8 }
 0x248   : > { %v1187_v15 = vrot.slane %v1186_v9, 2  ;;  %v1199_v16 = vrot.slane %v1198_v10, 2 }
 0x249   : > { %v1193_v17 = vrot.slane %v1192_v11, 2  ;;  %v1205_v18 = vrot.slane %v1204_v14, 2 }
 0x24a   : > { %v1188_v19 = vmax.f32 %v1186_v9, %v1187_v15  ;;  %v1200_v20 = vmax.f32 %v1198_v10, %v1199_v16 }
 0x24b   : > { %v1194_v21 = vmax.f32 %v1192_v11, %v1193_v17  ;;  %v1206_v23 = vmax.f32 %v1204_v14, %v1205_v18 }
 0x24c   : > { %v1189_v24 = vrot.slane %v1188_v19, 1  ;;  %v1201_v25 = vrot.slane %v1200_v20, 1 }
 0x24d   : > { %v1195_v26 = vrot.slane %v1194_v21, 1  ;;  %v1207_v27 = vrot.slane %v1206_v23, 1 }
 0x24e   : > { %v1190_v28 = vmax.f32 %v1188_v19, %v1189_v24  ;;  %v1202_v29 = vmax.f32 %v1200_v20, %v1201_v25 }
 0x24f   : > { %v1196_v30 = vmax.f32 %v1194_v21, %v1195_v26  ;;  %v1208_v32 = vmax.f32 %v1206_v23, %v1207_v27 }
 0x251   : > { %v1242_v33 = vcombine.low %v1190_v28, %v1196_v30  ;;  %v1243_v34 = vcombine.low %v1202_v29, %v1208_v32 }
 0x253   : > { %v1252_v35 = vrot.slane %v1242_v33, %v1251_v31  ;;  %v1259_v36 = vrot.slane %v1243_v34, %v1251_v31 }
 0x255   : > { %v1274_v37 = vcombine.low %v1252_v35, %v1259_v36 }
 0x257   : > { %v1282_v23 = vrot.slane %v1274_v37, %v1251_v31 }
 0x261   : > { %v1121_v46 = vpop.f32.mrb[8].mxu0  ;;  %v1162_v48 = vpop.f32.mrb[8].mxu1 }
 0x262   : > { %v1122_v49 = vadd.f32 %v1121_v46, %v664_v42  ;;  %v1163_v51 = vadd.f32 %v1162_v48, %v672_v43  ;;  %v1123_v52 = vpop.f32.mrb[9].mxu0  ;;  %v1164_v53 = vpop.f32.mrb[9].mxu1 }
 0x263   : > { %v1124_v54 = vadd.f32 %v1123_v52, %v668_v44  ;;  %v1165_v55 = vadd.f32 %v1164_v53, %v676_v45  ;;  %v1125_v56 = vpop.f32.mrb[10].mxu0  ;;  %v1166_v57 = vpop.f32.mrb[10].mxu1 }
 0x264   : > { %v1209_v58 = vrot.slane %v1122_v49, 4  ;;  %v1221_v59 = vrot.slane %v1163_v51, 4  ;;  %v1126_v60 = vpop.f32.mrb[11].mxu0  ;;  %v1167_v61 = vpop.f32.mrb[11].mxu1 }
 0x265   : > { %v1215_v62 = vrot.slane %v1124_v54, 4  ;;  %v1227_v47 = vrot.slane %v1165_v55, 4 }
 0x266   : > { %v1210_v63 = vmax.f32 %v1122_v49, %v1209_v58  ;;  %v1222_v0 = vmax.f32 %v1163_v51, %v1221_v59 }
 0x267   : > { %v1216_v1 = vmax.f32 %v1124_v54, %v1215_v62  ;;  %v1228_v50 = vmax.f32 %v1165_v55, %v1227_v47 }
 0x268   : > { %v1211_v2 = vrot.slane %v1210_v63, 2  ;;  %v1223_v3 = vrot.slane %v1222_v0, 2 }
 0x269   : > { %v1217_v4 = vrot.slane %v1216_v1, 2  ;;  %v1229_v5 = vrot.slane %v1228_v50, 2 }
 0x26a   : > { %v1212_v6 = vmax.f32 %v1210_v63, %v1211_v2  ;;  %v1224_v7 = vmax.f32 %v1222_v0, %v1223_v3 }
 0x26b   : > { %v1218_v8 = vmax.f32 %v1216_v1, %v1217_v4  ;;  %v1230_v9 = vmax.f32 %v1228_v50, %v1229_v5 }
 0x26c   : > { %v1213_v10 = vrot.slane %v1212_v6, 1  ;;  %v1225_v11 = vrot.slane %v1224_v7, 1 }
 0x26d   : > { %v1219_v12 = vrot.slane %v1218_v8, 1  ;;  %v1231_v13 = vrot.slane %v1230_v9, 1 }
 0x26e   : > { %v1214_v14 = vmax.f32 %v1212_v6, %v1213_v10  ;;  %v1226_v15 = vmax.f32 %v1224_v7, %v1225_v11 }
 0x26f   : > { %v1220_v16 = vmax.f32 %v1218_v8, %v1219_v12  ;;  %v1232_v17 = vmax.f32 %v1230_v9, %v1231_v13 }
 0x271   : > { %v1244_v18 = vcombine.low %v1214_v14, %v1220_v16  ;;  %v1245_v19 = vcombine.low %v1226_v15, %v1232_v17 }
 0x273   : > { %v1266_v20 = vrot.slane %v1244_v18, %v1251_v31  ;;  %v1273_v21 = vrot.slane %v1245_v19, %v1251_v31 }
 0x275   : > { %v1275_v22 = vcombine.low %v1266_v20, %v1273_v21 }
 0x277   : > { %v1289_v24 = vrot.slane %v1275_v22, %v1251_v31 }
 0x279   : > { %v1290_v25 = vcombine.low %v1282_v23, %v1289_v24 }
 0x27b   : > { %1293 = vst [vmem:[%s285_s11] sm:$0xff] %v1290_v25 }
 0x27c   : > { %1784 = shalt.err (!%p1781_p2)
}
 0x27d   : > { %s1785_s8 = scalar_lea.hbm %s2138_s10, 128  ;;  %s1789_s16 = scalar_lea.hbm %s2192_s5, 256 }
 0x27e   : > { %p1786_p0 = scmp.ne.s32.totalorder %s2138_s10, %s1785_s8  ;;  %p1790_p6 = scmp.lt.u32.totalorder %s2138_s10, %s2192_s5 }
 0x27f   : > { %p1791_p7 = scmp.lt.u32.totalorder %s1789_s16, %s1785_s8  ;;  %p1793_p8 = scmp.lt.u32.totalorder %s1785_s8, %s2138_s10 }
 0x280   : > { %p1787_p4 = pnand %p1786_p0, %p2207_p12 }
 0x281   : > { %p1792_p11 = por %p1791_p7, %p1790_p6 }
 0x282   : > { %p1788_p13 = pneg %p1787_p4 }
 0x283   : > { %p1794_p1 = por %p1793_p8, %p1792_p11 }
 0x285   : > { %p1795_p10 = pnand %p1794_p1, %p1788_p13 }
 0x287   : > { %1798 = shalt.err (!%p1795_p10)
}
 0x288   : > { %1579 = dma.vmem_to_hbm [thread:$0]  (%p2207_p12), %s2140_s15, 128, %s2138_s10, %s1295_s24  }
 0x289 PF: > { %s1321_s11 = sand.u32 1, %s1837_s18   ;;  %p2208_p3 = scmp.ne.s32.totalorder %s2200_s29, 0 }
 0x28a   : > { %p2209_p5 = scmp.ge.s32.totalorder %s1857_s23, 2  ;;  %s1322_s6 = scalar_lea.sflag [#allocation4], %s1321_s11 }
 0x28c   : > { %p1593_p9 = pnand %p2209_p5, %p2208_p3 }
 0x28e   : > { %1832 = dma.done.wait (!%p1593_p9), %s1322_s6, 128  }
 0x28f   : > { %1834 = vsyncadd (!%p1593_p9), %s1322_s6, 4294967168  ;;  %s22_s23 = sadd.s32 1, %s1857_s23   ;;  %s2210_s18 = smov %s1841_s19 }
 0x290   : > { %p19_p2 = scmp.ge.s32.totalorder %s22_s23, 4   ;;  %s2211_s19 = smov %s1845_s20 }
 0x291   : > { %s2212_s20 = smov %s2046_s17  ;;  %s2213_s21 = smov %s1853_s22 }
 0x292   : > { %s2214_s22 = smov %s2216_s12  ;;  %21 = sbr.rel (!%p19_p2) target bundleno = 7 (0x7), region = 97 }
 0x299   :  { %1327 = vsyncpa [#allocation3], 1 }
 0x29a   :  { %1329 = vsyncpa [#allocation3 + $0x1], 1 }
 0x29b   :  { %1330 = vsyncpa [#allocation6], 1 }
 0x29c   :  { %1331 = vsyncpa [#allocation4], 1 }
 0x29d   :  { %1333 = vsyncpa [#allocation4 + $0x1], 1 }

</bundles_post_ra>
